<compile_context>
chip_gen: v7x
topology: tpu7x:2x2x1
jax: 0.10.0
libtpu: 0.0.40
codegen_flags: <defaults>
</compile_context>

<pallas_src>
import functools

import jax
import jax.numpy as jnp
from jax.experimental import pallas as pl
from jax.experimental.pallas import tpu as pltpu

_LANE = 1024  # lane-dense last dim (multiple of 128)


def _round_up(a: int, b: int) -> int:
    return ((a + b - 1) // b) * b


def _dropout_kernel(bits_ref, x_ref, o_ref, *, threshold: int, scale: float):
    # keep where uniform >= p  <=>  raw uint32 bits >= round(p * 2^32)
    keep = bits_ref[...] >= jnp.uint32(threshold)
    x = x_ref[...]
    scaled = x * jnp.asarray(scale, dtype=x.dtype)  # native dtype (bf16 stays bf16)
    o_ref[...] = jnp.where(keep, scaled, jnp.zeros_like(scaled))


def dropout(x: jax.Array, p: float, *, seed: int = 0, training: bool = True) -> jax.Array:
    """Pallas TPU dropout. Matches Dropout.forward of the PyTorch module.

    Note: `seed` fixes the mask; vary it per call to mimic PyTorch's fresh
    randomness each forward.
    """
    if not training or p == 0.0:
        return x
    if p >= 1.0:
        # PyTorch would divide by zero; the useful limit is "drop everything".
        return jnp.zeros_like(x)

    orig_shape = x.shape
    n = x.size

    # Lane-dense 2-D slab: (rows, _LANE), rows a multiple of the row tile.
    rows_needed = -(-n // _LANE)
    tile_rows = 512 if rows_needed >= 512 else _round_up(rows_needed, 8)
    rows = _round_up(rows_needed, tile_rows)
    n_pad = rows * _LANE

    xf = x.reshape(-1)
    if n_pad != n:
        xf = jnp.pad(xf, (0, n_pad - n))
    x2 = xf.reshape(rows, _LANE)

    # Independent random bits for every (padded) element.
    bits = jax.random.bits(jax.random.PRNGKey(seed), (rows, _LANE), dtype=jnp.uint32)

    threshold = min(int(round(p * (2.0 ** 32))), 2 ** 32 - 1)
    scale = 1.0 / (1.0 - p)

    grid = (rows // tile_rows,)
    out2 = pl.pallas_call(
        functools.partial(_dropout_kernel, threshold=threshold, scale=scale),
        out_shape=jax.ShapeDtypeStruct((rows, _LANE), x.dtype),
        grid=grid,
        in_specs=[
            pl.BlockSpec((tile_rows, _LANE), lambda i: (i, 0)),  # random bits
            pl.BlockSpec((tile_rows, _LANE), lambda i: (i, 0)),  # x slab
        ],
        out_specs=pl.BlockSpec((tile_rows, _LANE), lambda i: (i, 0)),
        compiler_params=pltpu.CompilerParams(
            dimension_semantics=("parallel",),
            vmem_limit_bytes=32 * 1024 * 1024,
        ),
    )(bits, x2)

    return out2.reshape(-1)[:n].reshape(orig_shape)


if __name__ == "__main__":
    key = jax.random.PRNGKey(0)
    batch, seq, hidden = 2, 8, 32
    p = 0.1

    x = jax.random.normal(key, (batch, seq, hidden), dtype=jnp.float32)

    # Training mode: apply dropout.
    y = dropout(x, p, seed=42, training=True)
    y = jax.block_until_ready(y)

    # Every output element is either exactly 0 (dropped) or ~x / (1 - p) (kept).
    scaled = x / (1.0 - p)
    is_zero = jnp.isclose(y, 0.0)
    is_kept = jnp.isclose(y, scaled, rtol=1e-6, atol=1e-6)
    assert bool(jnp.all(is_zero | is_kept)), "dropout output not in {0, x/(1-p)}"
    assert y.shape == x.shape and y.dtype == x.dtype

    # Some elements kept, not everything dropped (loose, non-flaky sanity check).
    kept_frac = float(jnp.mean(jnp.isclose(y, scaled, rtol=1e-6, atol=1e-6) & ~jnp.isclose(x, 0.0)))
    assert kept_frac > 0.5, f"unexpectedly low keep fraction: {kept_frac}"

    # Eval mode: identity.
    y_eval = jax.block_until_ready(dropout(x, p, training=False))
    assert bool(jnp.all(y_eval == x))

    # p >= 1: all zeros (no NaN).
    y_all = jax.block_until_ready(dropout(x, 1.0, training=True))
    assert bool(jnp.all(y_all == 0))

    print("KERNEL_OK")
</pallas_src>

<mosaic_0001>
module attributes {stable_mosaic.version = 11 : i64} {
  func.func @_dropout_kernel(%arg0: i32, %arg1: memref<8x1024xi32, #tpu.memory_space<vmem>>, %arg2: memref<8x1024xf32, #tpu.memory_space<vmem>>, %arg3: memref<8x1024xf32, #tpu.memory_space<vmem>>) attributes {dimension_semantics = [#tpu.dimension_semantics<parallel>], iteration_bounds = array<i64: 1>, scalar_prefetch = 0 : i64, scratch_operands = 0 : i64, tpu.core_type = #tpu.core_type<tc>, window_params = [{transform_indices = @transform_0, window_bounds = array<i64: 8, 1024>}, {transform_indices = @transform_1, window_bounds = array<i64: 8, 1024>}, {transform_indices = @transform_2, window_bounds = array<i64: 8, 1024>}]} {
    %c0 = arith.constant 0 : index
    %c0_0 = arith.constant 0 : index
    %0 = vector.load %arg1[%c0, %c0_0] : memref<8x1024xi32, #tpu.memory_space<vmem>>, vector<8x1024xi32>
    %c429496730_i32 = arith.constant 429496730 : i32
    %1 = vector.broadcast %c429496730_i32 : i32 to vector<8x1024xi32>
    %2 = arith.cmpi uge, %0, %1 : vector<8x1024xi32>
    %c0_1 = arith.constant 0 : index
    %c0_2 = arith.constant 0 : index
    %3 = vector.load %arg2[%c0_1, %c0_2] : memref<8x1024xf32, #tpu.memory_space<vmem>>, vector<8x1024xf32>
    %cst = arith.constant 1.11111116 : f32
    %4 = vector.broadcast %cst : f32 to vector<8x1024xf32>
    %5 = arith.mulf %3, %4 : vector<8x1024xf32>
    %cst_3 = arith.constant 0.000000e+00 : f32
    %6 = vector.broadcast %cst_3 : f32 to vector<8x1024xf32>
    %7 = arith.select %2, %5, %6 : vector<8x1024xi1>, vector<8x1024xf32>
    %c0_4 = arith.constant 0 : index
    %c0_5 = arith.constant 0 : index
    %8 = vector.load %arg3[%c0_4, %c0_5] : memref<8x1024xf32, #tpu.memory_space<vmem>>, vector<8x1024xf32>
    tpu.vector_store %arg3[%c0_4, %c0_5], %7 {strides = array<i32>} : memref<8x1024xf32, #tpu.memory_space<vmem>>, vector<8x1024xf32>,
    return
  }
  func.func @transform_0(%arg0: i32) -> (i32, i32) {
    %c0_i32 = arith.constant 0 : i32
    %c0_i32_0 = arith.constant 0 : i32
    return %arg0, %c0_i32 : i32, i32
  }
  func.func @transform_1(%arg0: i32) -> (i32, i32) {
    %c0_i32 = arith.constant 0 : i32
    %c0_i32_0 = arith.constant 0 : i32
    return %arg0, %c0_i32 : i32, i32
  }
  func.func @transform_2(%arg0: i32) -> (i32, i32) {
    %c0_i32 = arith.constant 0 : i32
    %c0_i32_0 = arith.constant 0 : i32
    return %arg0, %c0_i32 : i32, i32
  }
}

</mosaic_0001>

<bundles_post_ra>
// kernel: tpu_custom_call.1
= control target key start
LH: loop header
LB: loop body
LE: loop exit
PB: predicated region body
PF: predicated region fallthrough
CT: control target
= control target key end

     0   :  { %7 = vsyncpa [#allocation3], 0  ;;  %s232_s0 = inlined_call_operand.hbm [shape: u32[8,1024], index: 0, kind: input, shape index: {}]   ;;  %s233_s1 = inlined_call_operand.hbm [shape: f32[8,1024], index: 1, kind: input, shape index: {}]   ;;  %s234_s2 = inlined_call_operand.hbm [shape: f32[8,1024], index: 2, kind: output, shape index: {}]  }
   0x1   :  { %8 = vsyncpa [#allocation6], 0 }
   0x2   :  { %9 = vsyncpa [#allocation4], 0  ;;  %s175_s9 = smov [#allocation2]   ;;  %s176_s11 = smov [#allocation5]  }
   0x3   :  { %s16_s10 = sshll.u32 %s175_s9, 4  ;;  %s26_s12 = sshll.u32 %s176_s11, 4  ;;  %s17_s10 = int_to_ptr.vmem [resolvable:$true] %s16_s10  ;;  %s27_s12 = int_to_ptr.vmem [resolvable:$true] %s26_s12 }
   0x4   :  { %s103_s15 = scalar_lea.hbm %s232_s0, 1024 }
   0x5   :  { %p104_p0 = scmp.ne.s32.totalorder %s232_s0, %s103_s15  ;;  %p107_p1 = scmp.lt.u32.totalorder %s103_s15, %s232_s0 }
   0x7   :  { %p109_p2 = pnand %p107_p1, %p104_p0 }
   0x9   :  { %112 = shalt.err (!%p109_p2)
}
   0xa   :  { %s113_s20 = scalar_lea.vmem %s17_s10, 1024  ;;  %p118_p4 = scmp.lt.s32.totalorder %s17_s10, %s17_s10 }
   0xb   :  { %p114_p3 = scmp.ne.s32.totalorder %s17_s10, %s113_s20  ;;  %p119_p5 = scmp.lt.s32.totalorder %s113_s20, %s113_s20 }
   0xd   :  { %p120_p6 = por %p119_p5, %p118_p4 }
   0xf   :  { %p121_p7 = pnand %p120_p6, %p114_p3 }
  0x11   :  { %124 = shalt.err (!%p121_p7)
}
  0x12   :  { %19 = dma.hbm_to_vmem [thread:$0]  %s232_s0, 1024, %s17_s10, [#allocation3]  }
  0x13   :  { %s125_s25 = scalar_lea.hbm %s233_s1, 1024 }
  0x14   :  { %p126_p8 = scmp.ne.s32.totalorder %s233_s1, %s125_s25  ;;  %p129_p9 = scmp.lt.u32.totalorder %s125_s25, %s233_s1 }
  0x16   :  { %p131_p10 = pnand %p129_p9, %p126_p8 }
  0x18   :  { %134 = shalt.err (!%p131_p10)
}
  0x19   :  { %s135_s30 = scalar_lea.vmem %s27_s12, 1024  ;;  %p140_p12 = scmp.lt.s32.totalorder %s27_s12, %s27_s12 }
  0x1a   :  { %p136_p11 = scmp.ne.s32.totalorder %s27_s12, %s135_s30  ;;  %p141_p13 = scmp.lt.s32.totalorder %s135_s30, %s135_s30 }
  0x1c   :  { %p142_p0 = por %p141_p13, %p140_p12 }
  0x1e   :  { %p143_p1 = pnand %p142_p0, %p136_p11 }
  0x20   :  { %146 = shalt.err (!%p143_p1)
}
  0x21   :  { %29 = dma.hbm_to_vmem [thread:$0]  %s233_s1, 1024, %s27_s12, [#allocation6]  }
  0x22   :  { %169 = dma.done.wait [#allocation3], 1024  }
  0x23   :  { %170 = vsyncadd [#allocation3], 4294966272 }
  0x24   :  { %171 = dma.done.wait [#allocation6], 1024  }
  0x25   :  { %172 = vsyncadd [#allocation6], 4294966272  ;;  %v36_v0 = vld [vmem:[#allocation2] sm:$0xff]  ;;  %v37_v2 = vld [vmem:[#allocation2 + $0x8] sm:$0xff]  ;;  %s177_s4 = smov [#allocation7]  }
  0x26   :  { %v52_v1 = vld [vmem:[#allocation5] sm:$0xff]  ;;  %vm44_vm0 = vcmp.ge.u32.totalorder %v36_v0, 429496730  ;;  %vm45_vm1 = vcmp.ge.u32.totalorder %v37_v2, 429496730  ;;  %v53_v4 = vld [vmem:[#allocation5 + $0x8] sm:$0xff] }
  0x27   :  { %v60_v3 = vmul.f32 1.1111112, %v52_v1  ;;  %v38_v5 = vld [vmem:[#allocation2 + $0x10] sm:$0xff]  ;;  %s217_s5 = sshll.u32 %s177_s4, 4  ;;  %v61_v8 = vmul.f32 1.1111112, %v53_v4  ;;  %s91_s5 = int_to_ptr.vmem [resolvable:$true] %s217_s5 }
  0x28   :  { %v54_v6 = vld [vmem:[#allocation5 + $0x10] sm:$0xff]  ;;  %vm46_vm2 = vcmp.ge.u32.totalorder %v38_v5, 429496730  ;;  %v39_v9 = vld [vmem:[#allocation2 + $0x18] sm:$0xff]  ;;  %v40_v12 = vld [vmem:[#allocation2 + $0x20] sm:$0xff]  ;;  %s147_s1 = scalar_lea.vmem %s91_s5, 1024  ;;  %p152_p3 = scmp.lt.s32.totalorder %s91_s5, %s91_s5 }
  0x29   :  { %v68_v7 = vsel %vm44_vm0, %v60_v3, 0.0  ;;  %v62_v10 = vmul.f32 1.1111112, %v54_v6  ;;  %vm47_vm3 = vcmp.ge.u32.totalorder %v39_v9, 429496730  ;;  %v55_v11 = vld [vmem:[#allocation5 + $0x18] sm:$0xff]  ;;  %p148_p2 = scmp.ne.s32.totalorder %s91_s5, %s147_s1  ;;  %p153_p4 = scmp.lt.s32.totalorder %s147_s1, %s147_s1 }
  0x2a   :  { %76 = vst [vmem:[#allocation7] sm:$0xff] %v68_v7  ;;  %v69_v13 = vsel %vm45_vm1, %v61_v8, 0.0  ;;  %v63_v14 = vmul.f32 1.1111112, %v55_v11  ;;  %vm48_vm4 = vcmp.ge.u32.totalorder %v40_v12, 429496730 }
  0x2b   :  { %v56_v15 = vld [vmem:[#allocation5 + $0x20] sm:$0xff]  ;;  %77 = vst [vmem:[#allocation7 + $0x8] sm:$0xff] %v69_v13  ;;  %v70_v16 = vsel %vm46_vm2, %v62_v10, 0.0  ;;  %v41_v18 = vld [vmem:[#allocation2 + $0x28] sm:$0xff]  ;;  %v42_v20 = vld [vmem:[#allocation2 + $0x30] sm:$0xff]  ;;  %p154_p5 = por %p153_p4, %p152_p3 }
  0x2c   :  { %v64_v17 = vmul.f32 1.1111112, %v56_v15  ;;  %v57_v19 = vld [vmem:[#allocation5 + $0x28] sm:$0xff]  ;;  %78 = vst [vmem:[#allocation7 + $0x10] sm:$0xff] %v70_v16  ;;  %v71_v21 = vsel %vm47_vm3, %v63_v14, 0.0  ;;  %v58_v23 = vld [vmem:[#allocation5 + $0x30] sm:$0xff] }
  0x2d   :  { %vm49_vm5 = vcmp.ge.u32.totalorder %v41_v18, 429496730  ;;  %v65_v22 = vmul.f32 1.1111112, %v57_v19  ;;  %79 = vst [vmem:[#allocation7 + $0x18] sm:$0xff] %v71_v21  ;;  %v43_v26 = vld [vmem:[#allocation2 + $0x38] sm:$0xff]  ;;  %p155_p6 = pnand %p154_p5, %p148_p2 }
  0x2e   :  { %v72_v24 = vsel %vm48_vm4, %v64_v17, 0.0  ;;  %vm50_vm6 = vcmp.ge.u32.totalorder %v42_v20, 429496730  ;;  %v66_v25 = vmul.f32 1.1111112, %v58_v23  ;;  %v59_v28 = vld [vmem:[#allocation5 + $0x38] sm:$0xff] }
  0x2f   :  { %80 = vst [vmem:[#allocation7 + $0x20] sm:$0xff] %v72_v24  ;;  %v73_v27 = vsel %vm49_vm5, %v65_v22, 0.0  ;;  %vm51_vm7 = vcmp.ge.u32.totalorder %v43_v26, 429496730  ;;  %v67_v30 = vmul.f32 1.1111112, %v59_v28 }
  0x30   :  { %81 = vst [vmem:[#allocation7 + $0x28] sm:$0xff] %v73_v27  ;;  %v74_v29 = vsel %vm50_vm6, %v66_v25, 0.0 }
  0x31   :  { %82 = vst [vmem:[#allocation7 + $0x30] sm:$0xff] %v74_v29  ;;  %v75_v31 = vsel %vm51_vm7, %v67_v30, 0.0 }
  0x32   :  { %83 = vst [vmem:[#allocation7 + $0x38] sm:$0xff] %v75_v31 }
  0x33   :  { %158 = shalt.err (!%p155_p6)
}
  0x34   :  { %s159_s8 = scalar_lea.hbm %s234_s2, 1024 }
  0x35   :  { %p160_p7 = scmp.ne.s32.totalorder %s234_s2, %s159_s8  ;;  %p163_p8 = scmp.lt.u32.totalorder %s159_s8, %s234_s2 }
  0x37   :  { %p165_p9 = pnand %p163_p8, %p160_p7 }
  0x39   :  { %168 = shalt.err (!%p165_p9)
}
  0x3a   :  { %93 = dma.vmem_to_hbm [thread:$0]  %s91_s5, 1024, %s234_s2, [#allocation4]  }
  0x3b   :  { %173 = dma.done.wait [#allocation4], 1024  }
  0x3c   :  { %174 = vsyncadd [#allocation4], 4294966272 }
  0x3d   :  { %97 = vsyncpa [#allocation3], 1 }
  0x3e   :  { %98 = vsyncpa [#allocation6], 1 }
  0x3f   :  { %99 = vsyncpa [#allocation4], 1 }

</bundles_post_ra>
